<compile_context>
chip_gen: v7x
topology: tpu7x:2x2x1
jax: 0.10.0
libtpu: 0.0.40
codegen_flags: <defaults>
</compile_context>

<pallas_src>
import functools

import jax
import jax.numpy as jnp
from jax.experimental import pallas as pl
from jax.experimental.pallas import tpu as pltpu

_LANES = 128


def _sublanes_for(dtype):
    """Minimum row alignment for unmasked tiles: 8 (f32), 16 (bf16), 32 (i8)."""
    itemsize = jnp.dtype(dtype).itemsize
    if itemsize >= 4:
        return 8
    return 32 // itemsize


def _round_up(x, m):
    return ((x + m - 1) // m) * m


# ----------------------------------------------------------------------------
# Kernels
# ----------------------------------------------------------------------------
def _gt_select_kernel(m_ref, vn_ref, v_ref, o_ref):
    """Wide path (width is a multiple of 128).

    m_ref : (tile, 1) int32 row flags -> broadcast across the lane axis.
    """
    o_ref[...] = jnp.where(m_ref[...] != 0, vn_ref[...], v_ref[...])


def _gt_select_kernel_packed(mb_ref, vn_ref, v_ref, o_ref, *, log2_d):
    """Lane-dense packed path: k = 128 // D original rows per lane row.

    mb_ref      : (tile, 1) int32 -- bit j is the flag of packed-row slot j.
    vn/v/o refs : (tile, 128)     -- lane-dense data (unmasked stores).

    Mask expansion is ~3 VALU ops per output vreg regardless of k:
        flag(lane) = (bits >> (lane >> log2_d)) & 1
    """
    tile, kd = o_ref.shape
    lane = jax.lax.broadcasted_iota(jnp.int32, (tile, kd), 1)
    slot = lane >> log2_d                                  # lane // D
    flag = jnp.right_shift(mb_ref[...], slot) & 1          # (tile,1) >> (tile,kd)
    o_ref[...] = jnp.where(flag != 0, vn_ref[...], v_ref[...])


# ----------------------------------------------------------------------------
# Tiling
# ----------------------------------------------------------------------------
def _choose_tile_rows(n_rows, row_bytes, sublanes, *,
                      target_bytes=4 << 20, min_split_bytes=256 << 10):
    """Pick a row tile:
      * ~4 MiB of data per wide operand per block (3 wide operands x 2
        pipeline buffers = 24 MiB of VMEM, within the raised scoped limit),
      * a multiple of the dtype's sublane alignment,
      * capped so the grid has >= 2 steps whenever the array is big enough,
        so v7x's two TensorCores both get work and the pipeline has depth.
    Ragged last blocks are handled by cdiv-based grids (OOB writes dropped).
    """
    total = n_rows * row_bytes
    if n_rows <= 2 * sublanes or total <= min_split_bytes:
        return n_rows  # single full-extent block; overhead is negligible here
    t = (target_bytes // max(row_bytes, 1)) // sublanes * sublanes
    t = max(sublanes, t)
    half = _round_up(-(-n_rows // 2), sublanes)  # ceil(n/2) rounded to sublanes
    t = min(t, half)                             # guarantee grid >= 2
    return max(sublanes, t)


# ----------------------------------------------------------------------------
# Wrapper
# ----------------------------------------------------------------------------
def gt_net_forward(inds, inds_n, v, v_n, *, tile_rows=None, force_pallas=False,
                   min_pallas_bytes=256 * 1024, donate_v=False):
    """Pallas implementation of GTNet.forward.

    inds, inds_n : int (N,)
    v, v_n       : float (N, D)   (model_input['hA'] / model_input['hA_n'])
    returns      : (N, D) -- v_n where inds == inds_n (row-wise), else v.
    """
    assert v.ndim == 2 and v.shape == v_n.shape
    N, D = v.shape
    assert inds.shape == (N,) and inds_n.shape == (N,)

    dtype = v.dtype
    itemsize = jnp.dtype(dtype).itemsize

    # Per-row selection flag, computed once outside the kernel (O(N) ints).
    m_rows = inds.astype(jnp.int32) == inds_n.astype(jnp.int32)

    # Tiny inputs: pallas_call dispatch overhead dwarfs the HBM traffic --
    # let XLA fuse the elementwise select instead.
    total_bytes = 3 * N * D * itemsize
    if not force_pallas and total_bytes < min_pallas_bytes:
        return jnp.where(m_rows[:, None], v_n, v)

    sublanes = _sublanes_for(dtype)

    # ---- layout selection: always present a lane-dense (multiple-of-128)
    # ---- last dim to the kernel so stores are unmasked full-width vst. -----
    if D % _LANES == 0:
        mode = "wide"
        n_rows_eff, width = N, D
        v_p, vn_p = v, v_n
        m_op = m_rows.astype(jnp.int32).reshape(N, 1)
        kernel = _gt_select_kernel
    elif D < _LANES and _LANES % D == 0:
        # Lane-dense packing: k rows per lane row (D is a power of two here).
        mode = "packed"
        k = _LANES // D
        n_pad = _round_up(N, k)
        if n_pad != N:
            pad = n_pad - N
            v = jnp.pad(v, ((0, pad), (0, 0)))
            v_n = jnp.pad(v_n, ((0, pad), (0, 0)))
            m_pad = jnp.pad(m_rows, (0, pad))
        else:
            m_pad = m_rows
        n_rows_eff = n_pad // k
        width = _LANES
        v_p = v.reshape(n_rows_eff, width)
        vn_p = v_n.reshape(n_rows_eff, width)
        # Pack the k per-slot flags of each packed row into one int32.
        weights = jnp.left_shift(jnp.int32(1), jnp.arange(k, dtype=jnp.int32))
        m_op = (m_pad.astype(jnp.int32).reshape(n_rows_eff, k) * weights).sum(
            axis=1, keepdims=True).astype(jnp.int32)
        kernel = functools.partial(_gt_select_kernel_packed,
                                   log2_d=D.bit_length() - 1)
    else:
        # Awkward D: pad the feature dim up to a multiple of 128 (cheap vs the
        # masked partial stores a narrow out_spec would force), slice after.
        mode = "padded"
        width = _round_up(D, _LANES)
        padc = width - D
        n_rows_eff = N
        v_p = jnp.pad(v, ((0, 0), (0, padc)))
        vn_p = jnp.pad(v_n, ((0, 0), (0, padc)))
        m_op = m_rows.astype(jnp.int32).reshape(N, 1)
        kernel = _gt_select_kernel

    row_bytes = width * itemsize
    if tile_rows is None:
        tile_rows = _choose_tile_rows(n_rows_eff, row_bytes, sublanes)
    # Keep user-supplied tiles legal: full extent, or a sublane multiple.
    if tile_rows >= n_rows_eff:
        tile_rows = n_rows_eff
    else:
        tile_rows = max(sublanes, (tile_rows // sublanes) * sublanes)

    grid = (pl.cdiv(n_rows_eff, tile_rows),)   # ragged last block is fine

    # 3 wide operands x 2 pipeline buffers per block, plus the tiny mask.
    block_bytes = tile_rows * width * itemsize
    vmem_limit = int(min(64 << 20,
                         max(32 << 20, 2 * (3 * block_bytes + tile_rows * 4) + (2 << 20))))

    extra = {}
    if donate_v:
        extra["input_output_aliases"] = {2: 0}   # alias v -> output

    out = pl.pallas_call(
        kernel,
        out_shape=jax.ShapeDtypeStruct((n_rows_eff, width), dtype),
        grid_spec=pltpu.PrefetchScalarGridSpec(
            num_scalar_prefetch=0,
            grid=grid,
            in_specs=[
                pl.BlockSpec((tile_rows, 1), lambda i: (i, 0)),       # mask
                pl.BlockSpec((tile_rows, width), lambda i: (i, 0)),   # v_n
                pl.BlockSpec((tile_rows, width), lambda i: (i, 0)),   # v
            ],
            out_specs=pl.BlockSpec((tile_rows, width), lambda i: (i, 0)),
        ),
        compiler_params=pltpu.CompilerParams(
            dimension_semantics=("parallel",),
            vmem_limit_bytes=vmem_limit,
        ),
        **extra,
    )(m_op, vn_p, v_p)

    if mode == "packed":
        out = out.reshape(-1, D)[:N]
    elif mode == "padded":
        out = out[:, :D]
    return out


def _reference(inds, inds_n, v, v_n):
    """Pure-JAX mirror of the PyTorch forward (arithmetic blend)."""
    N = v.shape[0]
    m_nxt = (inds == inds_n).astype(jnp.float32).reshape(N, 1)
    return v_n * m_nxt + v * (1.0 - m_nxt)


def _check(name, inds, inds_n, v, v_n):
    out = jax.block_until_ready(
        gt_net_forward(inds, inds_n, v, v_n, force_pallas=True))
    ref = _reference(inds, inds_n, v, v_n)
    assert out.shape == v.shape, f"{name}: bad output shape {out.shape}"
    assert jnp.allclose(out.astype(jnp.float32), ref, atol=1e-6), \
        f"{name}: mismatch vs reference"


def _make_case(key, n, d, dtype=jnp.float32):
    k1, k2, k3, k4 = jax.random.split(key, 4)
    inds = jax.random.randint(k1, (n,), 0, 4, dtype=jnp.int32)
    flip = jax.random.bernoulli(k2, 0.5, (n,))
    inds_n = jnp.where(flip, inds, inds + 1).astype(jnp.int32)
    v = jax.random.normal(k3, (n, d), dtype=jnp.float32).astype(dtype)
    v_n = jax.random.normal(k4, (n, d), dtype=jnp.float32).astype(dtype)
    return inds, inds_n, v, v_n


if __name__ == "__main__":
    key = jax.random.PRNGKey(0)
    k1, k2, k3, k4 = jax.random.split(key, 4)

    # Case 1: module's demo-ish shape, D=32 (< 128) -> lane-packed bitmask
    # path, N=10 not a multiple of k=4 -> exercises the row padding.
    _check("packed-f32", *_make_case(k1, 10, 32, jnp.float32))

    # Case 2: lane-aligned D=128 -> wide path with (tile, 1) mask broadcast.
    _check("wide-f32", *_make_case(k2, 16, 128, jnp.float32))

    # Case 3: awkward D=96 (not lane friendly) and N=520 -> padded-D path,
    # multi-step cdiv grid with a ragged last block (pipelined / megacore).
    _check("padded-ragged-f32", *_make_case(k3, 520, 96, jnp.float32))

    # Case 4: bf16 data -> dtype-aware (16-row) sublane alignment, packed path.
    _check("packed-bf16", *_make_case(k4, 24, 32, jnp.bfloat16))

    print("KERNEL_OK")
</pallas_src>

<mosaic_0001>
module attributes {stable_mosaic.version = 11 : i64} {
  func.func @_gt_select_kernel_packed(%arg0: i32, %arg1: memref<3x1xi32, #tpu.memory_space<vmem>>, %arg2: memref<3x128xf32, #tpu.memory_space<vmem>>, %arg3: memref<3x128xf32, #tpu.memory_space<vmem>>, %arg4: memref<3x128xf32, #tpu.memory_space<vmem>>) attributes {dimension_semantics = [#tpu.dimension_semantics<parallel>], iteration_bounds = array<i64: 1>, scalar_prefetch = 0 : i64, scratch_operands = 0 : i64, tpu.core_type = #tpu.core_type<tc>, window_params = [{transform_indices = @transform_0, window_bounds = array<i64: 3, 1>}, {transform_indices = @transform_1, window_bounds = array<i64: 3, 128>}, {transform_indices = @transform_2, window_bounds = array<i64: 3, 128>}, {transform_indices = @transform_3, window_bounds = array<i64: 3, 128>}]} {
    %0 = tpu.iota {dimensions = array<i32: 1>} : vector<3x128xi32>
    %c5_i32 = arith.constant 5 : i32
    %1 = vector.broadcast %c5_i32 : i32 to vector<3x128xi32>
    %2 = arith.shrsi %0, %1 : vector<3x128xi32>
    %c0 = arith.constant 0 : index
    %c0_0 = arith.constant 0 : index
    %3 = vector.load %arg1[%c0, %c0_0] : memref<3x1xi32, #tpu.memory_space<vmem>>, vector<3x1xi32>
    %4 = vector.broadcast %3 : vector<3x1xi32> to vector<3x128xi32>
    %5 = arith.shrsi %4, %2 : vector<3x128xi32>
    %c1_i32 = arith.constant 1 : i32
    %6 = vector.broadcast %c1_i32 : i32 to vector<3x128xi32>
    %7 = arith.andi %5, %6 : vector<3x128xi32>
    %c0_i32 = arith.constant 0 : i32
    %8 = vector.broadcast %c0_i32 : i32 to vector<3x128xi32>
    %9 = arith.cmpi ne, %7, %8 : vector<3x128xi32>
    %c0_1 = arith.constant 0 : index
    %c0_2 = arith.constant 0 : index
    %10 = vector.load %arg2[%c0_1, %c0_2] : memref<3x128xf32, #tpu.memory_space<vmem>>, vector<3x128xf32>
    %c0_3 = arith.constant 0 : index
    %c0_4 = arith.constant 0 : index
    %11 = vector.load %arg3[%c0_3, %c0_4] : memref<3x128xf32, #tpu.memory_space<vmem>>, vector<3x128xf32>
    %12 = arith.select %9, %10, %11 : vector<3x128xi1>, vector<3x128xf32>
    %c0_5 = arith.constant 0 : index
    %c0_6 = arith.constant 0 : index
    %13 = vector.load %arg4[%c0_5, %c0_6] : memref<3x128xf32, #tpu.memory_space<vmem>>, vector<3x128xf32>
    tpu.vector_store %arg4[%c0_5, %c0_6], %12 {strides = array<i32>} : memref<3x128xf32, #tpu.memory_space<vmem>>, vector<3x128xf32>,
    return
  }
  func.func @transform_0(%arg0: i32) -> (i32, i32) {
    %c0_i32 = arith.constant 0 : i32
    %c0_i32_0 = arith.constant 0 : i32
    return %arg0, %c0_i32 : i32, i32
  }
  func.func @transform_1(%arg0: i32) -> (i32, i32) {
    %c0_i32 = arith.constant 0 : i32
    %c0_i32_0 = arith.constant 0 : i32
    return %arg0, %c0_i32 : i32, i32
  }
  func.func @transform_2(%arg0: i32) -> (i32, i32) {
    %c0_i32 = arith.constant 0 : i32
    %c0_i32_0 = arith.constant 0 : i32
    return %arg0, %c0_i32 : i32, i32
  }
  func.func @transform_3(%arg0: i32) -> (i32, i32) {
    %c0_i32 = arith.constant 0 : i32
    %c0_i32_0 = arith.constant 0 : i32
    return %arg0, %c0_i32 : i32, i32
  }
}

</mosaic_0001>

<bundles_post_ra>
// kernel: tpu_custom_call.1
= control target key start
LH: loop header
LB: loop body
LE: loop exit
PB: predicated region body
PF: predicated region fallthrough
CT: control target
= control target key end

     0   :  { %s113_s0 = inlined_call_operand.vmem [shape: s32[3,1], index: 0, kind: input, shape index: {}]   ;;  %s114_s1 = inlined_call_operand.vmem [shape: f32[3,128], index: 1, kind: input, shape index: {}]   ;;  %s115_s2 = inlined_call_operand.vmem [shape: f32[3,128], index: 2, kind: input, shape index: {}]   ;;  %s116_s3 = inlined_call_operand.hbm [shape: f32[3,128], index: 3, kind: output, shape index: {}]  }
   0x1   :  { %v18_v0 = vld [vmem:[%s113_s0] sm:$0x7] }
   0x2   :  { %8 = vsyncpa [#allocation3], 0  ;;  %v70_v1 = vmov 0   ;;  %v15_v2 = vlaneseq  ;;  %s71_s14 = smov [#allocation2]   ;;  %v25_v8 = vld [vmem:[%s114_s1] sm:$0x7] }
   0x3   :  { %45 = vset.pattern.permute.xlu0 %v70_v1  ;;  %s35_s15 = sshll.u32 %s71_s14, 4  ;;  %v26_v9 = vld [vmem:[%s115_s2] sm:$0x7]  ;;  %s36_s15 = int_to_ptr.vmem [resolvable:$true] %s35_s15 }
   0x4   :  { %20 = vperm.xlu0 %45, %v18_v0   ;;  %v16_v3 = vand.u32 127, %v15_v2  ;;  %s46_s0 = scalar_lea.vmem %s36_s15, 64  ;;  %p51_p1 = scmp.lt.s32.totalorder %s36_s15, %s36_s15 }
   0x5   :  { %p47_p0 = scmp.ne.s32.totalorder %s36_s15, %s46_s0  ;;  %p52_p2 = scmp.lt.s32.totalorder %s46_s0, %s46_s0 }
   0x6   :  { %v17_v4 = vshra.s32 %v16_v3, 5 }
   0x7   :  { %p53_p3 = por %p52_p2, %p51_p1 }
   0x9   :  { %p54_p4 = pnand %p53_p3, %p47_p0 }
  0x83   :  { %v21_v5 = vpop.permute.xlu0 %20 }
  0x84   :  { %v22_v6 = vshra.s32 %v21_v5, %v17_v4 }
  0x86   :  { %v23_v7 = vand.u32 1, %v22_v6 }
  0x88   :  { %vm24_vm0 = vcmp.ne.s32.totalorder %v23_v7, 0 }
  0x89   :  { %v27_v10 = vsel %vm24_vm0, %v25_v8, %v26_v9 }
  0x8a   :  { %28 = vst [vmem:[#allocation2] sm:$0x7] %v27_v10 }
  0x8b   :  { %57 = shalt.err (!%p54_p4)
}
  0x8c   :  { %s58_s22 = scalar_lea.hbm %s116_s3, 64 }
  0x8d   :  { %p59_p5 = scmp.ne.s32.totalorder %s116_s3, %s58_s22  ;;  %p62_p6 = scmp.lt.u32.totalorder %s58_s22, %s116_s3 }
  0x8f   :  { %p64_p7 = pnand %p62_p6, %p59_p5 }
  0x91   :  { %67 = shalt.err (!%p64_p7)
}
  0x92   :  { %38 = dma.vmem_to_hbm [thread:$0]  %s36_s15, 64, %s116_s3, [#allocation3]  }
  0x93   :  { %68 = dma.done.wait [#allocation3], 64  }
  0x94   :  { %69 = vsyncadd [#allocation3], 4294967232 }
  0x95   :  { %42 = vsyncpa [#allocation3], 1 }

</bundles_post_ra>
